<compile_context>
chip_gen: v7x
topology: tpu7x:2x2x1
jax: 0.10.0
libtpu: 0.0.40
codegen_flags: <defaults>
</compile_context>

<pallas_src>
import jax
import jax.numpy as jnp
from jax.experimental import pallas as pl
from jax.experimental.pallas import tpu as pltpu

LANES = 128
MAX_TILE_ROWS = 8192                    # 8192 * 128 * 4B = 4 MiB f32 block; multiple of 32.
_VMEM_LIMIT_BYTES = 40 * 1024 * 1024    # covers 2x(in+out) 4 MiB f32 buffers on v5e/v6e/v7x.


def _round_up(x, m):
    return ((x + m - 1) // m) * m


def _pixel_preprocess_kernel(x_ref, o_ref):
    # Fused cast (free on the VPU) + one mul + one sub per vreg.  Multiply by
    # the reciprocal instead of dividing: avoids the EUP recip + refine chain
    # (<= 1 ulp difference vs torch's x.div(255.)).
    x = x_ref[...].astype(jnp.float32)
    y = x * jnp.float32(1.0 / 255.0) - jnp.float32(0.5)
    o_ref[...] = y.astype(o_ref.dtype)


def pixel_preprocess(x, out_dtype=None):
    """Normalizes pixel observations to [-0.5, 0.5]. Matches x.div(255.).sub(.5)."""
    orig_shape = x.shape

    # Pallas TPU has no 64-bit support; downcast defensively (JAX x64 is off by default).
    if x.dtype == jnp.float64:
        x = x.astype(jnp.float32)
    elif x.dtype in (jnp.int64, jnp.uint64):
        x = x.astype(jnp.int32)

    if out_dtype is None:
        # PyTorch semantics: float inputs keep their dtype; integer inputs promote to f32.
        out_dtype = x.dtype if jnp.issubdtype(x.dtype, jnp.floating) else jnp.float32
    out_dtype = jnp.dtype(out_dtype)

    n = x.size
    if n == 0:
        return jnp.zeros(orig_shape, out_dtype)

    flat = jnp.reshape(x, (-1,))

    # Pad only to a lane multiple (128); in the common pixel case (B*C*H*W
    # divisible by 128) this reshape is pure metadata with zero HBM traffic.
    n_pad = _round_up(n, LANES)
    padded = n_pad != n
    if padded:
        flat = jnp.pad(flat, (0, n_pad - n))

    rows = n_pad // LANES
    x2d = jnp.reshape(flat, (rows, LANES))

    # Tile choice:
    #  * capped at MAX_TILE_ROWS (4 MiB f32 block -> per-step overhead negligible)
    #  * at least 2 grid steps when possible so the "parallel" axis shards
    #    across both TensorCores on v7x
    #  * multiple of 32 so packed dtypes (u8/i8) never need masked/relayout loads
    tile_rows = min(MAX_TILE_ROWS, _round_up(pl.cdiv(rows, 2), 32))
    if tile_rows >= rows:
        tile_rows = rows  # single full-extent block (full-dim exception)
    grid = (pl.cdiv(rows, tile_rows),)

    in_bytes = n_pad * x2d.dtype.itemsize
    out_bytes = n_pad * out_dtype.itemsize

    out2d = pl.pallas_call(
        _pixel_preprocess_kernel,
        out_shape=jax.ShapeDtypeStruct((rows, LANES), out_dtype),
        grid=grid,
        in_specs=[pl.BlockSpec((tile_rows, LANES), lambda i: (i, 0))],
        out_specs=pl.BlockSpec((tile_rows, LANES), lambda i: (i, 0)),
        compiler_params=pltpu.CompilerParams(
            dimension_semantics=("parallel",),
            vmem_limit_bytes=_VMEM_LIMIT_BYTES,
        ),
        cost_estimate=pl.CostEstimate(
            flops=2 * n_pad,
            transcendentals=0,
            bytes_accessed=in_bytes + out_bytes,
        ),
    )(x2d)

    out_flat = jnp.reshape(out2d, (-1,))
    if padded:
        out_flat = out_flat[:n]
    return jnp.reshape(out_flat, orig_shape)


if __name__ == "__main__":
    key = jax.random.PRNGKey(0)
    # Pixel observations, NCHW: batch=2, channels=4 (stacked frames), 16x16.
    x_int = jax.random.randint(key, (2, 4, 16, 16), 0, 256, dtype=jnp.int32)

    # Float input path (dtype preserved).
    x_f32 = x_int.astype(jnp.float32)
    y_f32 = jax.block_until_ready(pixel_preprocess(x_f32))
    y_ref_f32 = x_f32 / 255.0 - 0.5
    assert y_f32.shape == x_f32.shape and y_f32.dtype == jnp.float32
    assert jnp.allclose(y_f32, y_ref_f32, atol=1e-5), "float32 mismatch vs reference"

    # Integer (uint8 pixel) input path: cast fused into the kernel, promotes to f32.
    x_u8 = x_int.astype(jnp.uint8)
    y_u8 = jax.block_until_ready(pixel_preprocess(x_u8))
    y_ref_u8 = x_u8.astype(jnp.float32) / 255.0 - 0.5
    assert y_u8.shape == x_u8.shape and y_u8.dtype == jnp.float32
    assert jnp.allclose(y_u8, y_ref_u8, atol=1e-5), "uint8 mismatch vs reference"

    # Optional bf16-out path for bf16 consumers (gated on caller; not PyTorch default).
    y_bf16 = jax.block_until_ready(pixel_preprocess(x_u8, out_dtype=jnp.bfloat16))
    assert y_bf16.dtype == jnp.bfloat16 and y_bf16.shape == x_u8.shape
    assert jnp.allclose(y_bf16.astype(jnp.float32), y_ref_u8, atol=4e-3), "bf16 mismatch"

    print("KERNEL_OK")
</pallas_src>

<mosaic_0001>
module attributes {stable_mosaic.version = 11 : i64} {
  func.func @_pixel_preprocess_kernel(%arg0: i32, %arg1: memref<16x128xf32, #tpu.memory_space<vmem>>, %arg2: memref<16x128xf32, #tpu.memory_space<vmem>>) attributes {dimension_semantics = [#tpu.dimension_semantics<parallel>], iteration_bounds = array<i64: 1>, scalar_prefetch = 0 : i64, scratch_operands = 0 : i64, tpu.core_type = #tpu.core_type<tc>, window_params = [{transform_indices = @transform_0, window_bounds = array<i64: 16, 128>}, {transform_indices = @transform_1, window_bounds = array<i64: 16, 128>}]} {
    %c0 = arith.constant 0 : index
    %c0_0 = arith.constant 0 : index
    %0 = vector.load %arg1[%c0, %c0_0] : memref<16x128xf32, #tpu.memory_space<vmem>>, vector<16x128xf32>
    %cst = arith.constant 0.00392156886 : f32
    %1 = vector.broadcast %cst : f32 to vector<16x128xf32>
    %2 = arith.mulf %0, %1 : vector<16x128xf32>
    %cst_1 = arith.constant 5.000000e-01 : f32
    %3 = vector.broadcast %cst_1 : f32 to vector<16x128xf32>
    %4 = arith.subf %2, %3 : vector<16x128xf32>
    %c0_2 = arith.constant 0 : index
    %c0_3 = arith.constant 0 : index
    %5 = vector.load %arg2[%c0_2, %c0_3] : memref<16x128xf32, #tpu.memory_space<vmem>>, vector<16x128xf32>
    tpu.vector_store %arg2[%c0_2, %c0_3], %4 {strides = array<i32>} : memref<16x128xf32, #tpu.memory_space<vmem>>, vector<16x128xf32>,
    return
  }
  func.func @transform_0(%arg0: i32) -> (i32, i32) {
    %c0_i32 = arith.constant 0 : i32
    %c0_i32_0 = arith.constant 0 : i32
    return %arg0, %c0_i32 : i32, i32
  }
  func.func @transform_1(%arg0: i32) -> (i32, i32) {
    %c0_i32 = arith.constant 0 : i32
    %c0_i32_0 = arith.constant 0 : i32
    return %arg0, %c0_i32 : i32, i32
  }
}

</mosaic_0001>

<bundles_post_ra>
// kernel: tpu_custom_call.1
= control target key start
LH: loop header
LB: loop body
LE: loop exit
PB: predicated region body
PF: predicated region fallthrough
CT: control target
= control target key end

     0   :  { %6 = vsyncpa [#allocation3], 0  ;;  %s146_s0 = inlined_call_operand.hbm [shape: f32[16,128], index: 0, kind: input, shape index: {}]   ;;  %s147_s1 = inlined_call_operand.hbm [shape: f32[16,128], index: 1, kind: output, shape index: {}]  }
   0x1   :  { %7 = vsyncpa [#allocation4], 0  ;;  %s102_s6 = smov [#allocation2]   ;;  %s54_s10 = scalar_lea.hbm %s146_s0, 256 }
   0x2   :  { %s13_s7 = sshll.u32 %s102_s6, 4  ;;  %p55_p0 = scmp.ne.s32.totalorder %s146_s0, %s54_s10  ;;  %s14_s7 = int_to_ptr.vmem [resolvable:$true] %s13_s7 }
   0x3   :  { %p58_p1 = scmp.lt.u32.totalorder %s54_s10, %s146_s0 }
   0x5   :  { %p60_p2 = pnand %p58_p1, %p55_p0 }
   0x7   :  { %63 = shalt.err (!%p60_p2)
}
   0x8   :  { %s64_s15 = scalar_lea.vmem %s14_s7, 256  ;;  %p69_p4 = scmp.lt.s32.totalorder %s14_s7, %s14_s7 }
   0x9   :  { %p65_p3 = scmp.ne.s32.totalorder %s14_s7, %s64_s15  ;;  %p70_p5 = scmp.lt.s32.totalorder %s64_s15, %s64_s15 }
   0xb   :  { %p71_p6 = por %p70_p5, %p69_p4 }
   0xd   :  { %p72_p7 = pnand %p71_p6, %p65_p3 }
   0xf   :  { %75 = shalt.err (!%p72_p7)
}
  0x10   :  { %s103_s16 = smov 128   ;;  %s104_s17 = smov 8  }
  0x11   :  { %19 = dma.hbm_to_vmem [thread:$0]  %s146_s0, 256, %s14_s7, [#allocation3], %s103_s16, %s103_s16, %s104_s17  }
  0x12   :  { %98 = dma.done.wait [#allocation3], 256  }
  0x13   :  { %99 = vsyncadd [#allocation3], 4294967040  ;;  %v23_v0 = vld [vmem:[#allocation2] sm:$0xff]  ;;  %v24_v1 = vld [vmem:[#allocation2 + $0x8] sm:$0xff]  ;;  %s105_s20 = smov [#allocation5]  }
  0x14   :  { %s36_s21 = sshll.u32 %s105_s20, 4  ;;  %v25_v2 = vmul.f32 0.003921569, %v23_v0  ;;  %v26_v3 = vmul.f32 0.003921569, %v24_v1  ;;  %s37_s21 = int_to_ptr.vmem [resolvable:$true] %s36_s21 }
  0x15   :  { %s76_s22 = scalar_lea.vmem %s37_s21, 256  ;;  %p81_p9 = scmp.lt.s32.totalorder %s37_s21, %s37_s21 }
  0x16   :  { %v48_v4 = vadd.f32 -0.5, %v25_v2  ;;  %v49_v5 = vadd.f32 -0.5, %v26_v3  ;;  %p77_p8 = scmp.ne.s32.totalorder %s37_s21, %s76_s22  ;;  %p82_p10 = scmp.lt.s32.totalorder %s76_s22, %s76_s22 }
  0x18   :  { %29 = vst [vmem:[#allocation5] sm:$0xff] %v48_v4  ;;  %30 = vst [vmem:[#allocation5 + $0x8] sm:$0xff] %v49_v5  ;;  %p83_p11 = por %p82_p10, %p81_p9 }
  0x1a   :  { %p84_p12 = pnand %p83_p11, %p77_p8 }
  0x1c   :  { %87 = shalt.err (!%p84_p12)
}
  0x1d   :  { %s88_s24 = scalar_lea.hbm %s147_s1, 256 }
  0x1e   :  { %p89_p13 = scmp.ne.s32.totalorder %s147_s1, %s88_s24  ;;  %p92_p0 = scmp.lt.u32.totalorder %s88_s24, %s147_s1 }
  0x20   :  { %p94_p1 = pnand %p92_p0, %p89_p13 }
  0x22   :  { %97 = shalt.err (!%p94_p1)
}
  0x23   :  { %42 = dma.vmem_to_hbm [thread:$0]  %s37_s21, 256, %s147_s1, [#allocation4], %s103_s16, %s103_s16, %s104_s17  }
  0x24   :  { %100 = dma.done.wait [#allocation4], 256  }
  0x25   :  { %101 = vsyncadd [#allocation4], 4294967040 }
  0x26   :  { %46 = vsyncpa [#allocation3], 1 }
  0x27   :  { %47 = vsyncpa [#allocation4], 1 }

</bundles_post_ra>
